<compile_context>
chip_gen: v6e
topology: v6e:2x2x1
jax: 0.10.0
libtpu: 0.0.40
codegen_flags: <defaults>
</compile_context>

<pallas_src>
import functools
import math

import jax
import jax.numpy as jnp
from jax import lax
from jax.experimental import pallas as pl
from jax.experimental.pallas import tpu as pltpu


# ----------------------------- config (synthetic) -----------------------------
VOCAB_SIZE = 64
HIDDEN_SIZE = 128
MAX_POSITION_EMBEDDINGS = 16
TYPE_VOCAB_SIZE = 2
PAD_TOKEN_ID = 0
LAYER_NORM_EPS = 1e-12          # config.layer_norm_eps (BERT-style default)
HIDDEN_DROPOUT_PROB = 0.1       # forward evaluated in eval mode (dropout = identity)

BATCH = 2
SEQ = 8

MAX_ROW_TILE = 2048             # upper cap on rows per grid step


# --------------------------------- kernel ------------------------------------
def _embeddings_kernel(*refs, ts, seq_len, scale, eps,
                       word_in_vmem, custom_pos, unroll):
    """One grid step processes `ts` flattened (batch*seq) rows.

    Ref order (PrefetchScalarGridSpec):
      ids, tt, (pos_ids)                  SMEM (N,) int32  [scalar prefetch]
      word, pos_tab, type_tab, gamma, beta   inputs
      out                                  VMEM (ts, H) output tile
      acc                                  VMEM (ts, H) f32 scratch
      (wbuf, sem)                          only when the word table lives in HBM
    """
    i = 0
    ids_ref = refs[i]; i += 1
    tt_ref = refs[i]; i += 1
    posid_ref = None
    if custom_pos:
        posid_ref = refs[i]; i += 1
    word_ref, pos_ref, type_ref, gamma_ref, beta_ref, out_ref, acc_ref = refs[i:i + 7]
    i += 7
    wbuf_ref = sem_ref = None
    if not word_in_vmem:
        wbuf_ref, sem_ref = refs[i:i + 2]

    g = pl.program_id(0)
    base = g * ts

    # ---- HBM word-table path: issue row-gather DMAs one grid step ahead -------
    if not word_in_vmem:
        n_tiles = pl.num_programs(0)

        def issue(tile, slot):
            row0 = tile * ts

            # TODO(synk): for very large ts, chunk this loop to bound the number of
            # outstanding DMA descriptors.
            def body(r, carry):
                tok = ids_ref[row0 + r]
                pltpu.make_async_copy(
                    word_ref.at[pl.ds(tok, 1), :],
                    wbuf_ref.at[pl.ds(slot * ts + r, 1), :],
                    sem_ref.at[slot]).start()
                return carry

            lax.fori_loop(0, ts, body, 0, unroll=unroll)

        @pl.when(g == 0)                 # prime slot 0 on the first step
        def _():
            issue(0, 0)

        @pl.when(g + 1 < n_tiles)        # cross-step prefetch of next tile's rows
        def _():
            issue(g + 1, (g + 1) % 2)

    # ---- per-row gathers from the small pinned VMEM tables ---------------------
    #      (this work overlaps the in-flight word-row DMAs on the HBM path)
    def gather_row(r, carry):
        tt = tt_ref[base + r]
        row = type_ref[pl.ds(tt, 1), :].astype(jnp.float32)
        if custom_pos:
            p = posid_ref[base + r]
            row = row + pos_ref[pl.ds(p, 1), :].astype(jnp.float32)
        if word_in_vmem:
            tok = ids_ref[base + r]
            row = row + word_ref[pl.ds(tok, 1), :].astype(jnp.float32) * scale
        acc_ref[pl.ds(r, 1), :] = row
        return carry

    lax.fori_loop(0, ts, gather_row, 0, unroll=unroll)

    x = acc_ref[...]

    if not custom_pos:
        # Default positions are arange(S); since ts divides S, this tile's rows use a
        # contiguous slice of the pinned position table.
        start = pl.multiple_of((base % seq_len), 8)
        x = x + pos_ref[pl.ds(start, ts), :].astype(jnp.float32)

    if not word_in_vmem:
        # Single bulk wait covering all ts equal-sized row copies of this slot.
        slot = g % 2
        cur = wbuf_ref.at[pl.ds(slot * ts, ts), :]
        wait_src = word_ref.at[pl.ds(0, ts), :] if ts <= word_ref.shape[0] else cur
        pltpu.make_async_copy(wait_src, cur, sem_ref.at[slot]).wait()
        x = x + wbuf_ref[pl.ds(slot * ts, ts), :].astype(jnp.float32) * scale

    # ---- LayerNorm (two-pass centered variance; rsqrt on the EUP) --------------
    mean = jnp.mean(x, axis=-1, keepdims=True)
    xc = x - mean
    var = jnp.mean(xc * xc, axis=-1, keepdims=True)
    y = xc * lax.rsqrt(var + eps)
    y = y * gamma_ref[...].astype(jnp.float32) + beta_ref[...].astype(jnp.float32)

    # TODO(synk): nn.Dropout skipped -- forward implemented in eval mode (identity).
    out_ref[...] = y.astype(out_ref.dtype)


# -------------------------------- wrapper -------------------------------------
def _vmem_budget_bytes():
    try:
        cap = int(pltpu.get_tpu_info().vmem_capacity_bytes)
    except Exception:
        cap = 64 * 1024 * 1024           # conservative fallback (v7x per-core VMEM)
    return int(cap * 0.7)                # headroom for Mosaic-internal scratch


def _pick_row_tile(seq_len, n_rows, per_row_bytes, tile_budget_bytes, cap=MAX_ROW_TILE):
    """Largest multiple of 8 that divides seq_len and fits the VMEM tile budget."""
    # TODO(synk): tiles are restricted to divisors of S so default arange positions stay
    # a contiguous slice; for small S / large B the per-row position gather path could
    # allow tiles spanning several sequences.
    best = 8
    for cand in range(8, min(seq_len, cap) + 1, 8):
        if seq_len % cand == 0 and cand * per_row_bytes <= tile_budget_bytes:
            best = cand
    # Keep at least 2 grid steps when possible (megacore sharding / pipelining).
    while best > 8 and (n_rows // best) < 2:
        half = best // 2
        if half % 8 == 0 and seq_len % half == 0:
            best = half
        else:
            break
    return best


def modern_bert_embeddings(input_ids, params, token_type_ids=None, position_ids=None,
                           *, out_dtype=jnp.float32, force_hbm_word_table=False):
    """input_ids: (B, S) int -> (B, S, H) out_dtype."""
    b, s = input_ids.shape
    word = params["word_embeddings"]            # (V, H)
    pos_tab = params["position_embeddings"]     # (P, H)
    type_tab = params["token_type_embeddings"]  # (T, H)
    gamma = params["ln_gamma"].reshape(1, -1)   # (1, H)
    beta = params["ln_beta"].reshape(1, -1)     # (1, H)
    v, h = word.shape
    p_max = pos_tab.shape[0]
    t_sz = type_tab.shape[0]
    if s % 8 != 0:
        raise ValueError("sequence length must be a multiple of 8 for this kernel")
    if s > p_max:
        raise ValueError("sequence longer than max_position_embeddings")

    n = b * s
    custom_pos = position_ids is not None

    # ---- per-generation VMEM budgeting: path + tile selection -------------------
    budget = _vmem_budget_bytes()
    out_itemsize = jnp.dtype(out_dtype).itemsize
    word_itemsize = jnp.dtype(word.dtype).itemsize
    pinned = 2 * int(pos_tab.nbytes + type_tab.nbytes + gamma.nbytes + beta.nbytes)
    word_pinned = 2 * int(word.nbytes)
    word_in_vmem = (not force_hbm_word_table) and \
        (word_pinned + pinned + 64 * 1024 <= budget)

    per_row = 2 * h * out_itemsize + 4 * h          # double-buffered out tile + f32 acc
    if not word_in_vmem:
        per_row += 2 * h * word_itemsize            # double-buffered gathered word rows
    tile_budget = budget - pinned - (word_pinned if word_in_vmem else 0)
    ts = _pick_row_tile(s, n, per_row, tile_budget)
    n_tiles = n // ts

    # ---- flattened 1-D scalar-prefetch index arrays (SMEM) ----------------------
    # TODO(synk): for very large B*S, stream per-tile (1, ts) id blocks into SMEM via
    # BlockSpecs instead of prefetching the full 1-D arrays (SMEM capacity).
    # Out-of-range ids are clamped (PyTorch's nn.Embedding would raise instead).
    ids = jnp.clip(input_ids.reshape(n).astype(jnp.int32), 0, v - 1)
    if token_type_ids is None:
        tt = jnp.zeros((n,), jnp.int32)
    else:
        tt = jnp.clip(token_type_ids.reshape(n).astype(jnp.int32), 0, t_sz - 1)
    prefetch = [ids, tt]
    if custom_pos:
        pos_ids = jnp.broadcast_to(jnp.asarray(position_ids, jnp.int32), (b, s))
        prefetch.append(jnp.clip(pos_ids.reshape(n), 0, p_max - 1))

    kernel = functools.partial(
        _embeddings_kernel,
        ts=ts, seq_len=s, scale=float(math.sqrt(h)), eps=LAYER_NORM_EPS,
        word_in_vmem=word_in_vmem, custom_pos=custom_pos, unroll=min(ts, 8))

    word_spec = (pl.BlockSpec((v, h), lambda g, *_: (0, 0)) if word_in_vmem
                 else pl.BlockSpec(memory_space=pl.ANY))
    in_specs = [
        word_spec,                                              # word table (VMEM or HBM)
        pl.BlockSpec((p_max, h), lambda g, *_: (0, 0)),         # position table (pinned)
        pl.BlockSpec((t_sz, h), lambda g, *_: (0, 0)),          # token-type table (pinned)
        pl.BlockSpec((1, h), lambda g, *_: (0, 0)),             # gamma (pinned)
        pl.BlockSpec((1, h), lambda g, *_: (0, 0)),             # beta (pinned)
    ]
    scratch = [pltpu.VMEM((ts, h), jnp.float32)]                # f32 row accumulator
    if not word_in_vmem:
        scratch += [pltpu.VMEM((2 * ts, h), word.dtype),        # double-buffered word rows
                    pltpu.SemaphoreType.DMA((2,))]

    grid_spec = pltpu.PrefetchScalarGridSpec(
        num_scalar_prefetch=len(prefetch),
        grid=(n_tiles,),
        in_specs=in_specs,
        out_specs=pl.BlockSpec((ts, h), lambda g, *_: (g, 0)),
        scratch_shapes=scratch)

    # The HBM-gather path prefetches tile g+1's rows during step g, which requires
    # sequential grid semantics; the VMEM path is fully independent per step.
    # TODO(synk): recover v7x dual-TC parallelism on the HBM path with a leading
    # core-sized "parallel" axis partitioning the row tiles per core.
    semantics = ("parallel",) if word_in_vmem else ("arbitrary",)

    out = pl.pallas_call(
        kernel,
        out_shape=jax.ShapeDtypeStruct((n, h), out_dtype),
        grid_spec=grid_spec,
        compiler_params=pltpu.CompilerParams(
            dimension_semantics=semantics,
            vmem_limit_bytes=budget),
    )(*prefetch, word, pos_tab, type_tab, gamma, beta)

    return out.reshape(b, s, h)


# ----------------------------- param construction -----------------------------
def init_params(key, table_dtype=jnp.float32):
    # table_dtype=bf16 halves HBM traffic; the kernel upcasts to f32 internally.
    k_word, k_pos, k_type = jax.random.split(key, 3)
    word = jax.random.normal(k_word, (VOCAB_SIZE, HIDDEN_SIZE), jnp.float32) * 0.02
    word = word.at[PAD_TOKEN_ID].set(0.0)        # nn.Embedding padding_idx row
    pos = jax.random.normal(k_pos, (MAX_POSITION_EMBEDDINGS, HIDDEN_SIZE), jnp.float32) * 0.02
    typ = jax.random.normal(k_type, (TYPE_VOCAB_SIZE, HIDDEN_SIZE), jnp.float32) * 0.02
    return dict(
        word_embeddings=word.astype(table_dtype),
        position_embeddings=pos.astype(table_dtype),
        token_type_embeddings=typ.astype(table_dtype),
        ln_gamma=jnp.ones((1, HIDDEN_SIZE), jnp.float32),
        ln_beta=jnp.zeros((1, HIDDEN_SIZE), jnp.float32),
    )


# ------------------------------ pure-JAX reference -----------------------------
def _reference(input_ids, params, token_type_ids=None, position_ids=None):
    b, s = input_ids.shape
    h = params["word_embeddings"].shape[1]
    if position_ids is None:
        position_ids = jnp.broadcast_to(jnp.arange(s, dtype=jnp.int32)[None, :], (b, s))
    else:
        position_ids = jnp.broadcast_to(jnp.asarray(position_ids, jnp.int32), (b, s))
    if token_type_ids is None:
        token_type_ids = jnp.zeros_like(input_ids)
    w = params["word_embeddings"].astype(jnp.float32)[input_ids] * math.sqrt(h)
    p = params["position_embeddings"].astype(jnp.float32)[position_ids]
    t = params["token_type_embeddings"].astype(jnp.float32)[token_type_ids]
    x = w + p + t
    mean = jnp.mean(x, axis=-1, keepdims=True)
    var = jnp.mean((x - mean) ** 2, axis=-1, keepdims=True)
    y = (x - mean) / jnp.sqrt(var + LAYER_NORM_EPS)
    return y * params["ln_gamma"][0] + params["ln_beta"][0]


# ----------------------------------- main --------------------------------------
if __name__ == "__main__":
    key = jax.random.PRNGKey(0)
    k_params, k_ids, k_type = jax.random.split(key, 3)

    params = init_params(k_params)
    input_ids = jax.random.randint(k_ids, (BATCH, SEQ), 0, VOCAB_SIZE, dtype=jnp.int32)
    token_type_ids = jax.random.randint(k_type, (BATCH, SEQ), 0, TYPE_VOCAB_SIZE,
                                        dtype=jnp.int32)

    ref = _reference(input_ids, params, token_type_ids=token_type_ids)

    # Fast path: word table pinned in VMEM (fits easily at this config).
    out = jax.block_until_ready(
        modern_bert_embeddings(input_ids, params, token_type_ids=token_type_ids))
    assert out.shape == (BATCH, SEQ, HIDDEN_SIZE)
    assert jnp.allclose(out, ref, atol=1e-5, rtol=1e-5), \
        float(jnp.max(jnp.abs(out - ref)))

    # Large-vocab fallback: word table kept in HBM, double-buffered row-gather DMA.
    out_hbm = jax.block_until_ready(
        modern_bert_embeddings(input_ids, params, token_type_ids=token_type_ids,
                               force_hbm_word_table=True))
    assert jnp.allclose(out_hbm, ref, atol=1e-5, rtol=1e-5), \
        float(jnp.max(jnp.abs(out_hbm - ref)))

    # Custom position_ids path (per-row gather from the pinned position table).
    position_ids = jnp.broadcast_to(
        jnp.arange(SEQ - 1, -1, -1, dtype=jnp.int32)[None, :], (BATCH, SEQ))
    ref_pos = _reference(input_ids, params, token_type_ids=token_type_ids,
                         position_ids=position_ids)
    out_pos = jax.block_until_ready(
        modern_bert_embeddings(input_ids, params, token_type_ids=token_type_ids,
                               position_ids=position_ids))
    assert jnp.allclose(out_pos, ref_pos, atol=1e-5, rtol=1e-5), \
        float(jnp.max(jnp.abs(out_pos - ref_pos)))

    print("KERNEL_OK")
</pallas_src>

<mosaic_0001>
module attributes {stable_mosaic.version = 11 : i64} {
  func.func @_embeddings_kernel(%arg0: i32, %arg1: memref<16xi32, #tpu.memory_space<smem>>, %arg2: memref<16xi32, #tpu.memory_space<smem>>, %arg3: memref<64x128xf32, #tpu.memory_space<vmem>>, %arg4: memref<16x128xf32, #tpu.memory_space<vmem>>, %arg5: memref<2x128xf32, #tpu.memory_space<vmem>>, %arg6: memref<1x128xf32, #tpu.memory_space<vmem>>, %arg7: memref<1x128xf32, #tpu.memory_space<vmem>>, %arg8: memref<8x128xf32, #tpu.memory_space<vmem>>, %arg9: memref<8x128xf32, #tpu.memory_space<vmem>>) attributes {dimension_semantics = [#tpu.dimension_semantics<parallel>], iteration_bounds = array<i64: 2>, scalar_prefetch = 2 : i64, scratch_operands = 1 : i64, tpu.core_type = #tpu.core_type<tc>, window_params = [{pipeline_mode = #tpu.pipeline_mode<synchronous>, transform_indices = @transform_0, window_bounds = array<i64: 64, 128>}, {pipeline_mode = #tpu.pipeline_mode<synchronous>, transform_indices = @transform_1, window_bounds = array<i64: 16, 128>}, {pipeline_mode = #tpu.pipeline_mode<synchronous>, transform_indices = @transform_2, window_bounds = array<i64: 2, 128>}, {pipeline_mode = #tpu.pipeline_mode<synchronous>, transform_indices = @transform_3, window_bounds = array<i64: 1, 128>}, {pipeline_mode = #tpu.pipeline_mode<synchronous>, transform_indices = @transform_4, window_bounds = array<i64: 1, 128>}, {transform_indices = @transform_5, window_bounds = array<i64: 8, 128>}]} {
    %c8_i32 = arith.constant 8 : i32
    %0 = arith.muli %arg0, %c8_i32 : i32
    %c0_i32 = arith.constant 0 : i32
    %1 = arith.addi %0, %c0_i32 : i32
    %2 = arith.index_cast %1 : i32 to index
    %3 = memref.load %arg2[%2] : memref<16xi32, #tpu.memory_space<smem>>
    %4 = arith.index_cast %3 : i32 to index
    %c0 = arith.constant 0 : index
    %5 = vector.load %arg5[%4, %c0] : memref<2x128xf32, #tpu.memory_space<vmem>>, vector<1x128xf32>
    %6 = arith.addi %0, %c0_i32 : i32
    %7 = arith.index_cast %6 : i32 to index
    %8 = memref.load %arg1[%7] : memref<16xi32, #tpu.memory_space<smem>>
    %9 = arith.index_cast %8 : i32 to index
    %c0_0 = arith.constant 0 : index
    %10 = vector.load %arg3[%9, %c0_0] : memref<64x128xf32, #tpu.memory_space<vmem>>, vector<1x128xf32>
    %cst = arith.constant 11.3137083 : f32
    %11 = vector.broadcast %cst : f32 to vector<1x128xf32>
    %12 = arith.mulf %10, %11 : vector<1x128xf32>
    %13 = arith.addf %5, %12 : vector<1x128xf32>
    %14 = arith.index_cast %c0_i32 : i32 to index
    %c0_1 = arith.constant 0 : index
    %15 = vector.load %arg9[%14, %c0_1] : memref<8x128xf32, #tpu.memory_space<vmem>>, vector<1x128xf32>
    tpu.vector_store %arg9[%14, %c0_1], %13 {strides = array<i32>} : memref<8x128xf32, #tpu.memory_space<vmem>>, vector<1x128xf32>,
    %c1_i32 = arith.constant 1 : i32
    %16 = arith.addi %0, %c1_i32 : i32
    %17 = arith.index_cast %16 : i32 to index
    %18 = memref.load %arg2[%17] : memref<16xi32, #tpu.memory_space<smem>>
    %19 = arith.index_cast %18 : i32 to index
    %c0_2 = arith.constant 0 : index
    %20 = vector.load %arg5[%19, %c0_2] : memref<2x128xf32, #tpu.memory_space<vmem>>, vector<1x128xf32>
    %21 = arith.addi %0, %c1_i32 : i32
    %22 = arith.index_cast %21 : i32 to index
    %23 = memref.load %arg1[%22] : memref<16xi32, #tpu.memory_space<smem>>
    %24 = arith.index_cast %23 : i32 to index
    %c0_3 = arith.constant 0 : index
    %25 = vector.load %arg3[%24, %c0_3] : memref<64x128xf32, #tpu.memory_space<vmem>>, vector<1x128xf32>
    %cst_4 = arith.constant 11.3137083 : f32
    %26 = vector.broadcast %cst_4 : f32 to vector<1x128xf32>
    %27 = arith.mulf %25, %26 : vector<1x128xf32>
    %28 = arith.addf %20, %27 : vector<1x128xf32>
    %29 = arith.index_cast %c1_i32 : i32 to index
    %c0_5 = arith.constant 0 : index
    %30 = vector.load %arg9[%29, %c0_5] : memref<8x128xf32, #tpu.memory_space<vmem>>, vector<1x128xf32>
    tpu.vector_store %arg9[%29, %c0_5], %28 {strides = array<i32>} : memref<8x128xf32, #tpu.memory_space<vmem>>, vector<1x128xf32>,
    %c2_i32 = arith.constant 2 : i32
    %31 = arith.addi %0, %c2_i32 : i32
    %32 = arith.index_cast %31 : i32 to index
    %33 = memref.load %arg2[%32] : memref<16xi32, #tpu.memory_space<smem>>
    %34 = arith.index_cast %33 : i32 to index
    %c0_6 = arith.constant 0 : index
    %35 = vector.load %arg5[%34, %c0_6] : memref<2x128xf32, #tpu.memory_space<vmem>>, vector<1x128xf32>
    %36 = arith.addi %0, %c2_i32 : i32
    %37 = arith.index_cast %36 : i32 to index
    %38 = memref.load %arg1[%37] : memref<16xi32, #tpu.memory_space<smem>>
    %39 = arith.index_cast %38 : i32 to index
    %c0_7 = arith.constant 0 : index
    %40 = vector.load %arg3[%39, %c0_7] : memref<64x128xf32, #tpu.memory_space<vmem>>, vector<1x128xf32>
    %cst_8 = arith.constant 11.3137083 : f32
    %41 = vector.broadcast %cst_8 : f32 to vector<1x128xf32>
    %42 = arith.mulf %40, %41 : vector<1x128xf32>
    %43 = arith.addf %35, %42 : vector<1x128xf32>
    %44 = arith.index_cast %c2_i32 : i32 to index
    %c0_9 = arith.constant 0 : index
    %45 = vector.load %arg9[%44, %c0_9] : memref<8x128xf32, #tpu.memory_space<vmem>>, vector<1x128xf32>
    tpu.vector_store %arg9[%44, %c0_9], %43 {strides = array<i32>} : memref<8x128xf32, #tpu.memory_space<vmem>>, vector<1x128xf32>,
    %c3_i32 = arith.constant 3 : i32
    %46 = arith.addi %0, %c3_i32 : i32
    %47 = arith.index_cast %46 : i32 to index
    %48 = memref.load %arg2[%47] : memref<16xi32, #tpu.memory_space<smem>>
    %49 = arith.index_cast %48 : i32 to index
    %c0_10 = arith.constant 0 : index
    %50 = vector.load %arg5[%49, %c0_10] : memref<2x128xf32, #tpu.memory_space<vmem>>, vector<1x128xf32>
    %51 = arith.addi %0, %c3_i32 : i32
    %52 = arith.index_cast %51 : i32 to index
    %53 = memref.load %arg1[%52] : memref<16xi32, #tpu.memory_space<smem>>
    %54 = arith.index_cast %53 : i32 to index
    %c0_11 = arith.constant 0 : index
    %55 = vector.load %arg3[%54, %c0_11] : memref<64x128xf32, #tpu.memory_space<vmem>>, vector<1x128xf32>
    %cst_12 = arith.constant 11.3137083 : f32
    %56 = vector.broadcast %cst_12 : f32 to vector<1x128xf32>
    %57 = arith.mulf %55, %56 : vector<1x128xf32>
    %58 = arith.addf %50, %57 : vector<1x128xf32>
    %59 = arith.index_cast %c3_i32 : i32 to index
    %c0_13 = arith.constant 0 : index
    %60 = vector.load %arg9[%59, %c0_13] : memref<8x128xf32, #tpu.memory_space<vmem>>, vector<1x128xf32>
    tpu.vector_store %arg9[%59, %c0_13], %58 {strides = array<i32>} : memref<8x128xf32, #tpu.memory_space<vmem>>, vector<1x128xf32>,
    %c4_i32 = arith.constant 4 : i32
    %61 = arith.addi %0, %c4_i32 : i32
    %62 = arith.index_cast %61 : i32 to index
    %63 = memref.load %arg2[%62] : memref<16xi32, #tpu.memory_space<smem>>
    %64 = arith.index_cast %63 : i32 to index
    %c0_14 = arith.constant 0 : index
    %65 = vector.load %arg5[%64, %c0_14] : memref<2x128xf32, #tpu.memory_space<vmem>>, vector<1x128xf32>
    %66 = arith.addi %0, %c4_i32 : i32
    %67 = arith.index_cast %66 : i32 to index
    %68 = memref.load %arg1[%67] : memref<16xi32, #tpu.memory_space<smem>>
    %69 = arith.index_cast %68 : i32 to index
    %c0_15 = arith.constant 0 : index
    %70 = vector.load %arg3[%69, %c0_15] : memref<64x128xf32, #tpu.memory_space<vmem>>, vector<1x128xf32>
    %cst_16 = arith.constant 11.3137083 : f32
    %71 = vector.broadcast %cst_16 : f32 to vector<1x128xf32>
    %72 = arith.mulf %70, %71 : vector<1x128xf32>
    %73 = arith.addf %65, %72 : vector<1x128xf32>
    %74 = arith.index_cast %c4_i32 : i32 to index
    %c0_17 = arith.constant 0 : index
    %75 = vector.load %arg9[%74, %c0_17] : memref<8x128xf32, #tpu.memory_space<vmem>>, vector<1x128xf32>
    tpu.vector_store %arg9[%74, %c0_17], %73 {strides = array<i32>} : memref<8x128xf32, #tpu.memory_space<vmem>>, vector<1x128xf32>,
    %c5_i32 = arith.constant 5 : i32
    %76 = arith.addi %0, %c5_i32 : i32
    %77 = arith.index_cast %76 : i32 to index
    %78 = memref.load %arg2[%77] : memref<16xi32, #tpu.memory_space<smem>>
    %79 = arith.index_cast %78 : i32 to index
    %c0_18 = arith.constant 0 : index
    %80 = vector.load %arg5[%79, %c0_18] : memref<2x128xf32, #tpu.memory_space<vmem>>, vector<1x128xf32>
    %81 = arith.addi %0, %c5_i32 : i32
    %82 = arith.index_cast %81 : i32 to index
    %83 = memref.load %arg1[%82] : memref<16xi32, #tpu.memory_space<smem>>
    %84 = arith.index_cast %83 : i32 to index
    %c0_19 = arith.constant 0 : index
    %85 = vector.load %arg3[%84, %c0_19] : memref<64x128xf32, #tpu.memory_space<vmem>>, vector<1x128xf32>
    %cst_20 = arith.constant 11.3137083 : f32
    %86 = vector.broadcast %cst_20 : f32 to vector<1x128xf32>
    %87 = arith.mulf %85, %86 : vector<1x128xf32>
    %88 = arith.addf %80, %87 : vector<1x128xf32>
    %89 = arith.index_cast %c5_i32 : i32 to index
    %c0_21 = arith.constant 0 : index
    %90 = vector.load %arg9[%89, %c0_21] : memref<8x128xf32, #tpu.memory_space<vmem>>, vector<1x128xf32>
    tpu.vector_store %arg9[%89, %c0_21], %88 {strides = array<i32>} : memref<8x128xf32, #tpu.memory_space<vmem>>, vector<1x128xf32>,
    %c6_i32 = arith.constant 6 : i32
    %91 = arith.addi %0, %c6_i32 : i32
    %92 = arith.index_cast %91 : i32 to index
    %93 = memref.load %arg2[%92] : memref<16xi32, #tpu.memory_space<smem>>
    %94 = arith.index_cast %93 : i32 to index
    %c0_22 = arith.constant 0 : index
    %95 = vector.load %arg5[%94, %c0_22] : memref<2x128xf32, #tpu.memory_space<vmem>>, vector<1x128xf32>
    %96 = arith.addi %0, %c6_i32 : i32
    %97 = arith.index_cast %96 : i32 to index
    %98 = memref.load %arg1[%97] : memref<16xi32, #tpu.memory_space<smem>>
    %99 = arith.index_cast %98 : i32 to index
    %c0_23 = arith.constant 0 : index
    %100 = vector.load %arg3[%99, %c0_23] : memref<64x128xf32, #tpu.memory_space<vmem>>, vector<1x128xf32>
    %cst_24 = arith.constant 11.3137083 : f32
    %101 = vector.broadcast %cst_24 : f32 to vector<1x128xf32>
    %102 = arith.mulf %100, %101 : vector<1x128xf32>
    %103 = arith.addf %95, %102 : vector<1x128xf32>
    %104 = arith.index_cast %c6_i32 : i32 to index
    %c0_25 = arith.constant 0 : index
    %105 = vector.load %arg9[%104, %c0_25] : memref<8x128xf32, #tpu.memory_space<vmem>>, vector<1x128xf32>
    tpu.vector_store %arg9[%104, %c0_25], %103 {strides = array<i32>} : memref<8x128xf32, #tpu.memory_space<vmem>>, vector<1x128xf32>,
    %c7_i32 = arith.constant 7 : i32
    %106 = arith.addi %0, %c7_i32 : i32
    %107 = arith.index_cast %106 : i32 to index
    %108 = memref.load %arg2[%107] : memref<16xi32, #tpu.memory_space<smem>>
    %109 = arith.index_cast %108 : i32 to index
    %c0_26 = arith.constant 0 : index
    %110 = vector.load %arg5[%109, %c0_26] : memref<2x128xf32, #tpu.memory_space<vmem>>, vector<1x128xf32>
    %111 = arith.addi %0, %c7_i32 : i32
    %112 = arith.index_cast %111 : i32 to index
    %113 = memref.load %arg1[%112] : memref<16xi32, #tpu.memory_space<smem>>
    %114 = arith.index_cast %113 : i32 to index
    %c0_27 = arith.constant 0 : index
    %115 = vector.load %arg3[%114, %c0_27] : memref<64x128xf32, #tpu.memory_space<vmem>>, vector<1x128xf32>
    %cst_28 = arith.constant 11.3137083 : f32
    %116 = vector.broadcast %cst_28 : f32 to vector<1x128xf32>
    %117 = arith.mulf %115, %116 : vector<1x128xf32>
    %118 = arith.addf %110, %117 : vector<1x128xf32>
    %119 = arith.index_cast %c7_i32 : i32 to index
    %c0_29 = arith.constant 0 : index
    %120 = vector.load %arg9[%119, %c0_29] : memref<8x128xf32, #tpu.memory_space<vmem>>, vector<1x128xf32>
    tpu.vector_store %arg9[%119, %c0_29], %118 {strides = array<i32>} : memref<8x128xf32, #tpu.memory_space<vmem>>, vector<1x128xf32>,
    %c8_i32_30 = arith.constant 8 : i32
    %c0_31 = arith.constant 0 : index
    %c0_32 = arith.constant 0 : index
    %121 = vector.load %arg9[%c0_31, %c0_32] : memref<8x128xf32, #tpu.memory_space<vmem>>, vector<8x128xf32>
    %c8_i32_33 = arith.constant 8 : i32
    %c0_i32_34 = arith.constant 0 : i32
    %122 = arith.cmpi eq, %c8_i32_33, %c0_i32_34 : i32
    %c1_i32_35 = arith.constant 1 : i32
    %123 = arith.select %122, %c1_i32_35, %c8_i32_33 : i32
    %124 = arith.remsi %0, %123 : i32
    %c0_i32_36 = arith.constant 0 : i32
    %125 = arith.cmpi ne, %124, %c0_i32_36 : i32
    %c0_i32_37 = arith.constant 0 : i32
    %126 = arith.cmpi slt, %124, %c0_i32_37 : i32
    %c0_i32_38 = arith.constant 0 : i32
    %127 = arith.cmpi slt, %123, %c0_i32_38 : i32
    %128 = arith.xori %126, %127 : i1
    %129 = arith.andi %128, %125 : i1
    %130 = arith.addi %124, %123 : i32
    %131 = arith.select %129, %130, %124 : i32
    %132 = tpu.assume_multiple %131, 8 : i32
    %133 = arith.index_cast %132 : i32 to index
    %c0_39 = arith.constant 0 : index
    %134 = vector.load %arg4[%133, %c0_39] : memref<16x128xf32, #tpu.memory_space<vmem>>, vector<8x128xf32>
    %135 = arith.addf %121, %134 : vector<8x128xf32>
    %cst_40 = arith.constant dense<0.000000e+00> : vector<8xf32>
    %136 = vector.multi_reduction <add>, %135, %cst_40 [1] : vector<8x128xf32> to vector<8xf32>
    %137 = vector.shape_cast %136 : vector<8xf32> to vector<8x1xf32>
    %cst_41 = arith.constant 1.280000e+02 : f32
    %138 = vector.broadcast %cst_41 : f32 to vector<8x1xf32>
    %139 = arith.divf %137, %138 : vector<8x1xf32>
    %140 = vector.broadcast %139 : vector<8x1xf32> to vector<8x128xf32>
    %141 = arith.subf %135, %140 : vector<8x128xf32>
    %142 = arith.mulf %141, %141 : vector<8x128xf32>
    %cst_42 = arith.constant dense<0.000000e+00> : vector<8xf32>
    %143 = vector.multi_reduction <add>, %142, %cst_42 [1] : vector<8x128xf32> to vector<8xf32>
    %144 = vector.shape_cast %143 : vector<8xf32> to vector<8x1xf32>
    %cst_43 = arith.constant 1.280000e+02 : f32
    %145 = vector.broadcast %cst_43 : f32 to vector<8x1xf32>
    %146 = arith.divf %144, %145 : vector<8x1xf32>
    %cst_44 = arith.constant 9.99999996E-13 : f32
    %147 = vector.broadcast %cst_44 : f32 to vector<8x1xf32>
    %148 = arith.addf %146, %147 : vector<8x1xf32>
    %149 = math.rsqrt %148 : vector<8x1xf32>
    %150 = vector.broadcast %149 : vector<8x1xf32> to vector<8x128xf32>
    %151 = arith.mulf %141, %150 : vector<8x128xf32>
    %c0_45 = arith.constant 0 : index
    %c0_46 = arith.constant 0 : index
    %152 = vector.load %arg6[%c0_45, %c0_46] : memref<1x128xf32, #tpu.memory_space<vmem>>, vector<1x128xf32>
    %153 = vector.broadcast %152 : vector<1x128xf32> to vector<8x128xf32>
    %154 = arith.mulf %151, %153 : vector<8x128xf32>
    %c0_47 = arith.constant 0 : index
    %c0_48 = arith.constant 0 : index
    %155 = vector.load %arg7[%c0_47, %c0_48] : memref<1x128xf32, #tpu.memory_space<vmem>>, vector<1x128xf32>
    %156 = vector.broadcast %155 : vector<1x128xf32> to vector<8x128xf32>
    %157 = arith.addf %154, %156 : vector<8x128xf32>
    %c0_49 = arith.constant 0 : index
    %c0_50 = arith.constant 0 : index
    %158 = vector.load %arg8[%c0_49, %c0_50] : memref<8x128xf32, #tpu.memory_space<vmem>>, vector<8x128xf32>
    tpu.vector_store %arg8[%c0_49, %c0_50], %157 {strides = array<i32>} : memref<8x128xf32, #tpu.memory_space<vmem>>, vector<8x128xf32>,
    return
  }
  func.func @transform_0(%arg0: i32, %arg1: memref<16xi32, #tpu.memory_space<smem>>, %arg2: memref<16xi32, #tpu.memory_space<smem>>) -> (i32, i32) {
    %c0_i32 = arith.constant 0 : i32
    %c0_i32_0 = arith.constant 0 : i32
    %c0_i32_1 = arith.constant 0 : i32
    return %c0_i32, %c0_i32_0 : i32, i32
  }
  func.func @transform_1(%arg0: i32, %arg1: memref<16xi32, #tpu.memory_space<smem>>, %arg2: memref<16xi32, #tpu.memory_space<smem>>) -> (i32, i32) {
    %c0_i32 = arith.constant 0 : i32
    %c0_i32_0 = arith.constant 0 : i32
    %c0_i32_1 = arith.constant 0 : i32
    return %c0_i32, %c0_i32_0 : i32, i32
  }
  func.func @transform_2(%arg0: i32, %arg1: memref<16xi32, #tpu.memory_space<smem>>, %arg2: memref<16xi32, #tpu.memory_space<smem>>) -> (i32, i32) {
    %c0_i32 = arith.constant 0 : i32
    %c0_i32_0 = arith.constant 0 : i32
    %c0_i32_1 = arith.constant 0 : i32
    return %c0_i32, %c0_i32_0 : i32, i32
  }
  func.func @transform_3(%arg0: i32, %arg1: memref<16xi32, #tpu.memory_space<smem>>, %arg2: memref<16xi32, #tpu.memory_space<smem>>) -> (i32, i32) {
    %c0_i32 = arith.constant 0 : i32
    %c0_i32_0 = arith.constant 0 : i32
    %c0_i32_1 = arith.constant 0 : i32
    return %c0_i32, %c0_i32_0 : i32, i32
  }
  func.func @transform_4(%arg0: i32, %arg1: memref<16xi32, #tpu.memory_space<smem>>, %arg2: memref<16xi32, #tpu.memory_space<smem>>) -> (i32, i32) {
    %c0_i32 = arith.constant 0 : i32
    %c0_i32_0 = arith.constant 0 : i32
    %c0_i32_1 = arith.constant 0 : i32
    return %c0_i32, %c0_i32_0 : i32, i32
  }
  func.func @transform_5(%arg0: i32, %arg1: memref<16xi32, #tpu.memory_space<smem>>, %arg2: memref<16xi32, #tpu.memory_space<smem>>) -> (i32, i32) {
    %c0_i32 = arith.constant 0 : i32
    %c0_i32_0 = arith.constant 0 : i32
    return %arg0, %c0_i32 : i32, i32
  }
}

</mosaic_0001>

<bundles_post_ra>
// kernel: tpu_custom_call.1
= control target key start
LH: loop header
LB: loop body
LE: loop exit
PB: predicated region body
PF: predicated region fallthrough
CT: control target
= control target key end

     0   :  { %s696_s24 = smov [#allocation4]   ;;  %s940_s0 = inlined_call_operand.hbm [shape: s32[16], index: 0, kind: input, shape index: {}]   ;;  %s941_s2 = inlined_call_operand.hbm [shape: f32[64,128], index: 2, kind: input, shape index: {}]   ;;  %s942_s3 = inlined_call_operand.hbm [shape: f32[16,128], index: 3, kind: input, shape index: {}]   ;;  %s943_s4 = inlined_call_operand.vmem [shape: f32[2,128], index: 4, kind: input, shape index: {}]   ;;  %s944_s5 = inlined_call_operand.vmem [shape: f32[1,128], index: 5, kind: input, shape index: {}]   ;;  %s945_s6 = inlined_call_operand.vmem [shape: f32[1,128], index: 6, kind: input, shape index: {}]   ;;  %s946_s7 = inlined_call_operand.hbm [shape: f32[16,128], index: 7, kind: output, shape index: {}]   ;;  %s947_s1 = inlined_call_operand.vmem [shape: s32[16], index: 1, kind: input, shape index: {}]  }
   0x1   :  { %955 = sst [smem:[#allocation22_spill]] %s941_s2  ;;  %s14_s29 = sshll.u32 %s947_s1, 4  ;;  %s15_s29 = int_to_ptr.vmem [resolvable:$true] %s14_s29 }
   0x2   :  { %956 = sst [smem:[#allocation23_spill]] %s942_s3  ;;  %s560_s30 = scalar_lea.vmem %s15_s29, 16 }
   0x3   :  { %13 = dma.hbm_to_smem %s940_s0, 16, %s696_s24, [#allocation3] }
   0x4   :  { %p561_p0 = scmp.ne.s32.totalorder %s15_s29, %s560_s30  ;;  %p565_p1 = scmp.lt.s32.totalorder %s15_s29, %s15_s29 }
   0x5   :  { %p566_p2 = scmp.lt.s32.totalorder %s560_s30, %s560_s30 }
   0x7   :  { %p567_p3 = por %p566_p2, %p565_p1 }
   0x9   :  { %p568_p4 = pnand %p567_p3, %p561_p0 }
   0xb   :  { %571 = shalt.err (!%p568_p4)  }
   0xc   :  { %s697_s8 = smov [#allocation5]  }
   0xd   :  { %17 = dma.vmem_to_smem %s15_s29, 16, %s697_s8, [#allocation3] }
   0xe   :  { %666 = dma.done.wait [#allocation3], 32 }
   0xf   :  { %667 = vsyncadd [#allocation3], 4294967264 }
  0x10   :  { %19 = sfence }
  0x11   :  { %20 = vsyncpa [#allocation7], 0 }
  0x12   :  { %21 = vsyncpa [#allocation10], 0 }
  0x13   :  { %22 = vsyncpa [#allocation8], 0 }
  0x14   :  { %24 = vsyncpa [#allocation8 + $0x1], 0  ;;  %s749_s0 = smov 0   ;;  %s751_s1 = smov 0  }
  0x15   :  { %s753_s9 = smov 0   ;;  %s755_s10 = smov 0  }
  0x16 LB: > { %957 = sst [smem:[#allocation16_spill]] %s682_s0  ;;  %s770_s11 = sadd.s32 4294967295, %s694_s10   ;;  %s694_s10 = sphi %s755_s10, %s977_s10   ;;  %s690_s9 = sphi %s753_s9, %s979_s9   ;;  %s686_s1 = sphi %s751_s1, %s981_s1   ;;  %s682_s0 = sphi %s749_s0, %s980_s0  }
  0x17   : > { %958 = sst [smem:[#allocation17_spill]] %s690_s9  ;;  %s468_s12 = sadd.s32 4294967294, %s694_s10  }
  0x18   : > { %959 = sst [smem:[#allocation18_spill]] %s694_s10  ;;  %s774_s13 = sadd.s32 1, %s694_s10  }
  0x19   : > { %960 = sst [smem:[#allocation19_spill]] %s774_s13  ;;  %s142_s14 = sadd.s32 1, %s690_s9 }
  0x1a   : > { %s139_s15 = ssub.s32 %s694_s10, %s774_s13  ;;  %p152_p5 = scmp.ne.s32.totalorder %s690_s9, %s686_s1 }
  0x1b   : > { %p140_p6 = scmp.eq.s32.totalorder %s139_s15, 0  ;;  %p153_p7 = scmp.eq.s32.totalorder %s770_s11, 1 }
  0x1c   : > { %p158_p8 = scmp.ne.s32.totalorder %s686_s1, %s682_s0  ;;  %p159_p9 = scmp.eq.s32.totalorder %s468_s12, 1 }
  0x1d   : > { %s785_s16 = scalar_select %p140_p6, %s690_s9, %s142_s14  }
  0x1e   : > { %p787_p10 = por %p153_p7, %p152_p5  ;;  %p791_p11 = por %p159_p9, %p158_p8 }
  0x1f   : > { %961 = sst [smem:[#allocation20_spill]] %s785_s16  ;;  %p469_p12 = scmp.ge.s32.totalorder %s694_s10, 1 }
  0x20   : > { %s963_s18 = scalar_select %p791_p11, 1, 0 }
  0x21   : > { %p166_p13 = scmp.lt.s32.totalorder %s694_s10, 3  ;;  %p948_p0 = scmp.eq.s32.totalorder %s770_s11, 0 }
  0x22   : > { %964 = sst [smem:[#allocation21_spill]] %s963_s18  ;;  %s698_s20 = smov [#allocation6]  }
  0x23   : > { %p798_p1 = pnand %p469_p12, %p166_p13  ;;  %s178_s21 = sshll.u32 %s698_s20, 4  ;;  %s179_s21 = int_to_ptr.vmem [resolvable:$true] %s178_s21 }
  0x24   : > { %s699_s23 = smov [#allocation9]   ;;  %s583_s25 = scalar_lea.vmem %s179_s21, 1024 }
  0x25   : > { %p496_p2 = pneg %p798_p1  ;;  %s191_s24 = sshll.u32 %s699_s23, 4  ;;  %s192_s24 = int_to_ptr.vmem [resolvable:$true] %s191_s24 }
  0x26   : > { %p584_p5 = scmp.ne.s32.totalorder %s179_s21, %s583_s25  ;;  %p591_p8 = scmp.lt.s32.totalorder %s179_s21, %s179_s21 }
  0x27   : > { %p806_p3 = pnand %p948_p0, %p496_p2  ;;  %p592_p9 = scmp.lt.s32.totalorder %s583_s25, %s583_s25 }
  0x29   : > { %p574_p4 = pneg %p806_p3  ;;  %p593_p12 = por %p592_p9, %p591_p8 }
  0x2b   : > { %p586_p6 = pnand %p584_p5, %p574_p4 }
  0x2d   : > { %p587_p7 = pneg %p586_p6 }
  0x2f   : > { %p594_p13 = pnand %p593_p12, %p587_p7 }
  0x31   : > { %597 = shalt.err (!%p594_p13)
}
  0x32   : > { %s700_s26 = smov 128   ;;  %s701_s27 = smov 8  }
  0x33   : > { %s967_s2 = sld [smem:[#allocation22_spill]]  ;;  %s609_s30 = scalar_lea.vmem %s192_s24, 256 }
  0x34   : > { %p610_p2 = scmp.ne.s32.totalorder %s192_s24, %s609_s30  ;;  %p617_p0 = scmp.lt.s32.totalorder %s192_s24, %s192_s24 }
  0x35   : > { %p618_p11 = scmp.lt.s32.totalorder %s609_s30, %s609_s30 }
  0x36   : > { %p612_p5 = pnand %p610_p2, %p574_p4 }
  0x37   : > { %p619_p8 = por %p618_p11, %p617_p0 }
  0x38   : > { %p613_p6 = pneg %p612_p5 }
  0x39   : > { %499 = dma.hbm_to_vmem [thread:$0]  (!%p806_p3), %s967_s2, 1024, %s179_s21, [#allocation7], %s700_s26, %s700_s26, %s701_s27  }
  0x3a   : > { %p620_p7 = pnand %p619_p8, %p613_p6 }
  0x3c   : > { %623 = shalt.err (!%p620_p7)
}
  0x3d   : > { %s968_s3 = sld [smem:[#allocation23_spill]]  ;;  %p969_p9 = scmp.eq.s32.totalorder (!%p798_p1), %s770_s11, 0 }
  0x3f   : > { %216 = sbr.rel (%p798_p1) target bundleno = 432 (0x1b0), region = 40 }
  0x43   : > { %502 = dma.hbm_to_vmem [thread:$0]  (!%p806_p3), %s968_s3, 256, %s192_s24, [#allocation10], %s700_s26, %s700_s26, %s701_s27  }
  0x44   : > { %669 = dma.done.wait (%p969_p9), [#allocation7], 1024   ;;  %p970_p4 = pmov %p969_p9 }
  0x46   : > { %671 = vsyncadd (%p970_p4), [#allocation7], 4294966272  ;;  %p971_p12 = pmov %p970_p4 }
  0x47   : > { %p972_p11 = pmov %p970_p4 }
  0x48   : > { %673 = dma.done.wait (%p971_p12), [#allocation10], 256  }
  0x49   : > { %675 = vsyncadd (%p972_p11), [#allocation10], 4294967040  ;;  %s839_s14 = sshll.u32 %s770_s11, 3  ;;  %v480_v43 = vld [vmem:[%s944_s5] ss:$0 sm:$0xff]  ;;  %s483_s8 = sshll.u32 %s770_s11, 7 }
  0x4a   : > { %s244_s15 = sld [smem:[#allocation5 + %s839_s14]]  ;;  %s253_s19 = sadd.s32 1, %s839_s14  ;;  %v481_v45 = vld [vmem:[%s945_s6] ss:$0 sm:$0xff] }
  0x4b   : > { %s247_s20 = sld [smem:[#allocation4 + %s839_s14]]  ;;  %s263_s21 = sadd.s32 2, %s839_s14 }
  0x4c   : > { %s254_s22 = sld [smem:[#allocation5 + %s253_s19]]  ;;  %s273_s23 = sadd.s32 3, %s839_s14 }
  0x4d   : > { %s257_s24 = sld [smem:[#allocation4 + %s253_s19]]  ;;  %s283_s25 = sadd.s32 4, %s839_s14 }
  0x4e   : > { %s264_s26 = sld [smem:[#allocation5 + %s263_s21]]  ;;  %s293_s27 = sadd.s32 5, %s839_s14 }
  0x4f   : > { %s267_s28 = sld [smem:[#allocation4 + %s263_s21]]  ;;  %s303_s29 = sadd.s32 6, %s839_s14 }
  0x50   : > { %s245_s12 = scalar_lea.vmem %s943_s4, %s244_s15  ;;  %s274_s2 = sld [smem:[#allocation5 + %s273_s23]] }
  0x51   : > { %s277_s3 = sld [smem:[#allocation4 + %s273_s23]]  ;;  %v246_v0 = vld [vmem:[%s245_s12] sm:$0x1]  ;;  %s248_s16 = scalar_lea.vmem [#allocation6], %s247_s20 }
  0x52   : > { %v249_v1 = vld [vmem:[%s248_s16] sm:$0x1]  ;;  %s255_s18 = scalar_lea.vmem %s943_s4, %s254_s22  ;;  %s855_s0 = sld [smem:[#allocation5 + %s283_s25]] }
  0x53   : > { %v250_v2 = vmul.f32 11.313708, %v249_v1  ;;  %s857_s19 = sld [smem:[#allocation4 + %s283_s25]]  ;;  %v256_v3 = vld [vmem:[%s255_s18] sm:$0x1]  ;;  %s258_s21 = scalar_lea.vmem [#allocation6], %s257_s24 }
  0x54   : > { %v259_v4 = vld [vmem:[%s258_s21] sm:$0x1]  ;;  %s265_s15 = scalar_lea.vmem %s943_s4, %s264_s26  ;;  %s862_s23 = sld [smem:[#allocation5 + %s293_s27]] }
  0x55   : > { %v251_v5 = vadd.f32 %v250_v2, %v246_v0  ;;  %v260_v6 = vmul.f32 11.313708, %v259_v4  ;;  %s864_s9 = sld [smem:[#allocation4 + %s293_s27]]  ;;  %v266_v7 = vld [vmem:[%s265_s15] sm:$0x1]  ;;  %s268_s13 = scalar_lea.vmem [#allocation6], %s267_s28 }
  0x56   : > { %v269_v8 = vld [vmem:[%s268_s13] sm:$0x1]  ;;  %s275_s18 = scalar_lea.vmem %s943_s4, %s274_s2  ;;  %s869_s22 = sld [smem:[#allocation5 + %s303_s29]] }
  0x57   : > { %252 = vst [vmem:[#allocation2] sm:$0x1] %v251_v5  ;;  %v261_v9 = vadd.f32 %v260_v6, %v256_v3  ;;  %v270_v10 = vmul.f32 11.313708, %v269_v8  ;;  %s871_s10 = sld [smem:[#allocation4 + %s303_s29]]  ;;  %s278_s24 = scalar_lea.vmem [#allocation6], %s277_s3 }
  0x58   : > { %v276_v11 = vld [vmem:[%s275_s18] sm:$0x1]  ;;  %s285_s27 = scalar_lea.vmem %s943_s4, %s855_s0  ;;  %s313_s28 = sadd.s32 7, %s839_s14 }
  0x59   : > { %v279_v12 = vld [vmem:[%s278_s24] sm:$0x1]  ;;  %262 = vst [vmem:[#allocation2 + $0x1] sm:$0x1] %v261_v9  ;;  %v271_v13 = vadd.f32 %v270_v10, %v266_v7  ;;  %s878_s2 = sld [smem:[#allocation5 + %s313_s28]]  ;;  %s288_s29 = scalar_lea.vmem [#allocation6], %s857_s19 }
  0x5a   : > { %v280_v14 = vmul.f32 11.313708, %v279_v12  ;;  %v286_v15 = vld [vmem:[%s285_s27] sm:$0x1]  ;;  %s295_s12 = scalar_lea.vmem %s943_s4, %s862_s23  ;;  %s317_s21 = sld [smem:[#allocation4 + %s313_s28]] }
  0x5b   : > { %v289_v16 = vld [vmem:[%s288_s29] sm:$0x1]  ;;  %272 = vst [vmem:[#allocation2 + $0x2] sm:$0x1] %v271_v13  ;;  %p324_p0 = scmp.lt.s32.totalorder %s839_s14, 0  ;;  %s298_s0 = scalar_lea.vmem [#allocation6], %s864_s9 }
  0x5c   : > { %v281_v17 = vadd.f32 %v280_v14, %v276_v11  ;;  %v290_v18 = vmul.f32 11.313708, %v289_v16  ;;  %v296_v19 = vld [vmem:[%s295_s12] sm:$0x1]  ;;  %s305_s19 = scalar_lea.vmem %s943_s4, %s869_s22  ;;  %s325_s13 = ssub.s32 0, %s839_s14 }
  0x5d   : > { %v299_v20 = vld [vmem:[%s298_s0] sm:$0x1]  ;;  %s477_s23 = smin.u32 %s839_s14, %s325_s13  ;;  %s308_s16 = scalar_lea.vmem [#allocation6], %s871_s10 }
  0x5e   : > { %282 = vst [vmem:[#allocation2 + $0x3] sm:$0x1] %v281_v17  ;;  %v291_v21 = vadd.f32 %v290_v18, %v286_v15  ;;  %v300_v22 = vmul.f32 11.313708, %v299_v20  ;;  %v306_v23 = vld [vmem:[%s305_s19] sm:$0x1]  ;;  %s380_s15 = scalar_lea.hbm %s946_s7, %s483_s8 }
  0x5f   : > { %v309_v24 = vld [vmem:[%s308_s16] sm:$0x1]  ;;  %s327_s20 = sand.u32 7, %s477_s23   ;;  %s315_s24 = scalar_lea.vmem %s943_s4, %s878_s2 }
  0x60   : > { %292 = vst [vmem:[#allocation2 + $0x4] sm:$0x1] %v291_v21  ;;  %v301_v25 = vadd.f32 %v300_v22, %v296_v19  ;;  %v310_v26 = vmul.f32 11.313708, %v309_v24  ;;  %s328_s25 = ssub.s32 0, %s327_s20  ;;  %s318_s22 = scalar_lea.vmem [#allocation6], %s317_s21 }
  0x61   : > { %v316_v28 = vld [vmem:[%s315_s24] sm:$0x1]  ;;  %s983_s25 = smov (!%p324_p0, %s328_s25), %s327_s20  ;;  %s240_s14 = sand.u32 1, %s686_s1  }
  0x62   : > { %302 = vst [vmem:[#allocation2 + $0x5] sm:$0x1] %v301_v25  ;;  %v311_v27 = vadd.f32 %v310_v26, %v306_v23  ;;  %v319_v29 = vld [vmem:[%s318_s22] sm:$0x1]  ;;  %p479_p1 = scmp.lt.s32.totalorder %s983_s25, 0  ;;  %s334_s10 = sadd.s32 8, %s983_s25 }
  0x63   : > { %v320_v30 = vmul.f32 11.313708, %v319_v29  ;;  %s475_s27 = sshll.u32 %s240_s14, 3  ;;  %s369_s19 = scalar_lea.sflag [#allocation8], %s240_s14 }
  0x64   : > { %312 = vst [vmem:[#allocation2 + $0x6] sm:$0x1] %v311_v27  ;;  %s985_s10 = smov (!%p479_p1, %s334_s10), %s983_s25  ;;  %s242_s12 = scalar_lea.vmem [#allocation11], %s475_s27 }
  0x65   : > { %v321_v31 = vadd.f32 %v320_v30, %v316_v28  ;;  %s336_s26 = scalar_lea.vmem [#allocation9], %s985_s10  ;;  %s382_s21 = sshll.u32 %s242_s12, 4  ;;  %s383_s21 = int_to_ptr.vmem [resolvable:$true] %s382_s21 }
  0x66   : > { %v337_v32 = vld [vmem:[%s336_s26] sm:$0xff]  ;;  %s624_s13 = scalar_lea.vmem %s383_s21, 128  ;;  %s702_s23 = smov [#allocation11]  }
  0x67   : > { %322 = vst [vmem:[#allocation2 + $0x7] sm:$0x1] %v321_v31  ;;  %p625_p3 = scmp.ne.s32.totalorder %s383_s21, %s624_s13  ;;  %s628_s16 = sshll.u32 %s702_s23, 4  ;;  %s629_s16 = int_to_ptr.vmem [resolvable:$false] %s628_s16 }
  0x68   : > { %s630_s11 = scalar_lea.vmem %s629_s16, 256  ;;  %p631_p5 = scmp.lt.s32.totalorder %s383_s21, %s629_s16 }
  0x69   : > { %p626_p13 = pnand %p625_p3, %p787_p10  ;;  %p632_p6 = scmp.lt.s32.totalorder %s630_s11, %s624_s13 }
  0x6b   : > { %p627_p2 = pneg %p626_p13  ;;  %p633_p8 = por %p632_p6, %p631_p5 }
  0x6d   : > { %p634_p7 = pnand %p633_p8, %p627_p2 }
  0x6e   : > { %v323_v33 = vld [vmem:[#allocation2] sm:$0xff] }
  0x6f   : > { %v338_v34 = vadd.f32 %v337_v32, %v323_v33 }
  0x71   : > { %339 = vadd.xlane.f32.xlu0 %v338_v34 }
  0xfa   : > { %v340_v35 = vpop.xlane.xlu0 %339 }
  0xfb   : > { %v342_v36 = vmul.f32 0.0078125, %v340_v35 }
  0xfd   : > { %v343_v37 = vsub.f32 %v338_v34, %v342_v36 }
  0xff   : > { %v344_v38 = vmul.f32 %v343_v37, %v343_v37 }
 0x101   : > { %345 = vadd.xlane.f32.xlu0 %v344_v38 }
 0x18a   : > { %v346_v39 = vpop.xlane.xlu0 %345 }
 0x18b   : > { %v347_v40 = vmul.f32 0.0078125, %v346_v39 }
 0x18d   : > { %v348_v41 = vadd.f32 1e-12, %v347_v40 }
 0x18f   : > { %550 = vrsqrt.f32 %v348_v41 }
 0x19c   : > { %v551_v42 = vpop.eup %550 }
 0x19d   : > { %v350_v44 = vmul.f32 %v551_v42, %v343_v37 }
 0x19f   : > { %v358_v46 = vmul.f32 %v480_v43, %v350_v44 }
 0x1a1   : > { %v366_v47 = vadd.f32 %v481_v45, %v358_v46 }
 0x1a3   : > { %367 = vst [vmem:[%s242_s12] sm:$0xff] %v366_v47 }
 0x1a4   : > { %637 = shalt.err (!%p634_p7)
}
 0x1a5   : > { %s638_s20 = scalar_lea.hbm %s380_s15, 128  ;;  %s642_s24 = scalar_lea.hbm %s946_s7, 256 }
 0x1a6   : > { %p639_p9 = scmp.ne.s32.totalorder %s380_s15, %s638_s20  ;;  %p643_p11 = scmp.lt.s32.totalorder %s380_s15, %s946_s7 }
 0x1a7   : > { %p644_p0 = scmp.lt.s32.totalorder %s642_s24, %s638_s20 }
 0x1a8   : > { %p640_p4 = pnand %p639_p9, %p787_p10 }
 0x1a9   : > { %p645_p1 = por %p644_p0, %p643_p11 }
 0x1aa   : > { %p641_p12 = pneg %p640_p4 }
 0x1ac   : > { %p646_p3 = pnand %p645_p1, %p641_p12 }
 0x1ae   : > { %649 = shalt.err (!%p646_p3)
}
 0x1af   : > { %494 = dma.vmem_to_hbm [thread:$0]  (%p787_p10), %s383_s21, 128, %s380_s15, %s369_s19  }
 0x1b0 PF: > { %s973_s10 = sld [smem:[#allocation18_spill]] }
 0x1b1   : > { %s974_s26 = sld [smem:[#allocation16_spill]] }
 0x1b2   : > { %s975_s14 = sld [smem:[#allocation21_spill]] }
 0x1b6   : > { %p511_p13 = scmp.ge.s32.totalorder %s973_s10, 2 }
 0x1b7   : > { %s394_s27 = sand.u32 1, %s974_s26  }
 0x1b8   : > { %p976_p2 = scmp.ne.s32.totalorder %s975_s14, 0  ;;  %s395_s28 = scalar_lea.sflag [#allocation8], %s394_s27 }
 0x1ba   : > { %p504_p5 = pnand %p511_p13, %p976_p2 }
 0x1bc   : > { %p505_p6 = pneg %p504_p5 }
 0x1be   : > { %677 = dma.done.wait (%p505_p6), %s395_s28, 128  }
 0x1bf   : > { %679 = vsyncadd (%p505_p6), %s395_s28, 4294967168  ;;  %s977_s10 = sld [smem:[#allocation19_spill]]  ;;  %s980_s0 = smov %s686_s1 }
 0x1c0   : > { %s978_s2 = sld [smem:[#allocation17_spill]] }
 0x1c1   : > { %s979_s9 = sld [smem:[#allocation20_spill]] }
 0x1c5   : > { %p27_p8 = scmp.ge.s32.totalorder %s977_s10, 4  }
 0x1c6   : > { %s981_s1 = smov %s978_s2 }
 0x1c7   :  { %29 = sbr.rel (!%p27_p8) target bundleno = 22 (0x16), region = 98 }
 0x1cc   :  { %400 = vsyncpa [#allocation7], 1 }
 0x1cd   :  { %402 = vsyncpa [#allocation7 + $0x1], 1 }
 0x1ce   :  { %403 = vsyncpa [#allocation10], 1 }
 0x1cf   :  { %404 = vsyncpa [#allocation8], 1 }
 0x1d0   :  { %406 = vsyncpa [#allocation8 + $0x1], 1 }

</bundles_post_ra>
